<compile_context>
chip_gen: v6e
topology: v6e:2x2x1
jax: 0.10.0
libtpu: 0.0.40
codegen_flags: <defaults>
</compile_context>

<pallas_src>
import jax
import jax.numpy as jnp
from jax import lax
from jax.experimental import pallas as pl
from jax.experimental.pallas import tpu as pltpu

RRELU_SLOPE = (1.0 / 8.0 + 1.0 / 3.0) / 2.0  # torch.rrelu eval-mode slope = 11/48


def _round_up(n, m):
    return ((n + m - 1) // m) * m


def mlp_regressor_kernel(x_ref, w1_ref, b1_ref, w2_ref, b2_ref, o_ref):
    # x:  [TB, D] f32   w1: [D, H] bf16   b1: [1, H] f32
    # w2: [1, H] f32    b2: [1, 1] f32    o:  [1, TB] f32 (lane-dense output row)
    #
    # In-kernel bf16 cast (VPU op hidden under DMA/MXU) -> fc1 on the MXU, f32 acc.
    x_bf16 = x_ref[...].astype(jnp.bfloat16)
    h = jnp.dot(x_bf16, w1_ref[...], preferred_element_type=jnp.float32)  # [TB, H]
    h = h + b1_ref[...]
    # rrelu, eval-mode deterministic slope.
    h = jnp.where(h >= 0.0, h, h * RRELU_SLOPE)
    # fc2: contract H of w2 [1, H] against H of h [TB, H] -> [1, TB] directly on the
    # MXU (== matmul with trans_b); no [TB, 1] intermediate, no XLU reduce/transpose.
    out_row = lax.dot_general(
        w2_ref[...], h,
        dimension_numbers=(((1,), (1,)), ((), ())),
        preferred_element_type=jnp.float32)                               # [1, TB]
    o_ref[...] = (out_row + b2_ref[...]).astype(o_ref.dtype)


def prepare_params(w1, b1, w2, b2):
    """One-time param prep (hoisted out of the per-call path).

    PyTorch layouts in: w1 [H, D], b1 [H], w2 [1, H], b2 [1].
    """
    w1_t = jnp.transpose(w1).astype(jnp.bfloat16)   # [D, H]  (MXU operand)
    b1_r = b1.reshape(1, -1).astype(jnp.float32)    # [1, H]
    w2_r = w2.reshape(1, -1).astype(jnp.float32)    # [1, H]
    b2_r = b2.reshape(1, 1).astype(jnp.float32)     # [1, 1]
    return w1_t, b1_r, w2_r, b2_r


def _choose_tiling(B, tile_b_max):
    """Pick (tile_b, num_tiles): tile_b multiple of 128, >=2 even steps when large."""
    b128 = _round_up(B, 128)
    if b128 <= tile_b_max:
        return b128, 1                                   # tiny batch: single block
    num_tiles = _round_up(pl.cdiv(b128, tile_b_max), 2)  # even step count for v7x
    tile_b = _round_up(pl.cdiv(b128, num_tiles), 128)
    num_tiles = pl.cdiv(b128, tile_b)
    return tile_b, num_tiles


def mlp_regressor_forward(x, w1_t, b1_r, w2_r, b2_r, *, tile_b=4096):
    """x: [B, D] f32; params from prepare_params(). Returns [B, 1] f32."""
    B, D = x.shape
    H = w1_t.shape[1]

    tile_b, num_tiles = _choose_tiling(B, tile_b)

    cost = pl.CostEstimate(
        flops=2 * B * D * H + 4 * B * H,        # fc1 matmul + bias/rrelu/fc2
        transcendentals=0,
        bytes_accessed=(B * D * 4               # x (f32, read once in-kernel)
                        + D * H * 2             # w1 (bf16)
                        + 2 * H * 4 + 4         # b1, w2, b2 (f32)
                        + num_tiles * tile_b * 4),  # output slab (f32)
    )

    out_slab = pl.pallas_call(
        mlp_regressor_kernel,
        out_shape=jax.ShapeDtypeStruct((num_tiles, tile_b), jnp.float32),
        grid=(num_tiles,),
        in_specs=[
            pl.BlockSpec((tile_b, D), lambda i: (i, 0)),   # x: pipelined batch tiles
            pl.BlockSpec((D, H), lambda i: (0, 0)),        # w1: VMEM-resident
            pl.BlockSpec((1, H), lambda i: (0, 0)),        # b1: resident
            pl.BlockSpec((1, H), lambda i: (0, 0)),        # w2 row: resident
            pl.BlockSpec((1, 1), lambda i: (0, 0)),        # b2: resident
        ],
        out_specs=pl.BlockSpec((1, tile_b), lambda i: (i, 0)),  # lane-dense rows
        compiler_params=pltpu.CompilerParams(
            dimension_semantics=("parallel",)),
        cost_estimate=cost,
    )(x, w1_t, b1_r, w2_r, b2_r)

    # (num_tiles, tile_b) row-major == batch order; drop the padded tail, restore [B, 1].
    return out_slab.reshape(num_tiles * tile_b)[:B].reshape(B, 1)


def reference_forward(x, w1, b1, w2, b2):
    """Same precision convention as the kernel: bf16 fc1 inputs, f32 everything else."""
    h = jnp.dot(x.astype(jnp.bfloat16), jnp.transpose(w1).astype(jnp.bfloat16),
                preferred_element_type=jnp.float32) + b1
    h = jnp.where(h >= 0.0, h, h * RRELU_SLOPE)
    return jnp.dot(h, w2.T, preferred_element_type=jnp.float32,
                   precision=lax.Precision.HIGHEST) + b2


def reference_forward_f32(x, w1, b1, w2, b2):
    """Pure f32 reference (what a PyTorch f32 forward computes)."""
    h = jnp.dot(x, w1.T, preferred_element_type=jnp.float32,
                precision=lax.Precision.HIGHEST) + b1
    h = jnp.where(h >= 0.0, h, h * RRELU_SLOPE)
    return jnp.dot(h, w2.T, preferred_element_type=jnp.float32,
                   precision=lax.Precision.HIGHEST) + b2


# TODO(synk): training-side pieces (MSELoss, SGD optimizer, DataLoader loop,
# torch.save/restore) and training-mode rrelu (per-element random slope) are not
# kernelized; only the eval-mode forward pass is implemented here.

if __name__ == "__main__":
    key = jax.random.PRNGKey(0)
    # B=200 deliberately not a multiple of the 128/256 tile: exercises the
    # no-pad partial-block path (tail rows are discarded by the [:B] slice).
    B, D, H = 200, 32, 50  # batch, input_dim, fc1 out_features

    kx, k1, k2, k3, k4 = jax.random.split(key, 5)
    x = jax.random.normal(kx, (B, D), dtype=jnp.float32)

    # nn.Linear default init: U(-1/sqrt(fan_in), 1/sqrt(fan_in)).
    bound1 = 1.0 / jnp.sqrt(jnp.float32(D))
    w1 = jax.random.uniform(k1, (H, D), jnp.float32, -bound1, bound1)
    b1 = jax.random.uniform(k2, (H,), jnp.float32, -bound1, bound1)
    bound2 = 1.0 / jnp.sqrt(jnp.float32(H))
    w2 = jax.random.uniform(k3, (1, H), jnp.float32, -bound2, bound2)
    b2 = jax.random.uniform(k4, (1,), jnp.float32, -bound2, bound2)

    params = prepare_params(w1, b1, w2, b2)
    fwd = jax.jit(mlp_regressor_forward)
    y = fwd(x, *params)
    jax.block_until_ready(y)
    assert y.shape == (B, 1)

    # Tight check vs a reference using the kernel's precision convention.
    y_ref = reference_forward(x, w1, b1, w2, b2)
    err = float(jnp.max(jnp.abs(y - y_ref)))
    assert jnp.allclose(y, y_ref, atol=5e-3, rtol=5e-3), err

    # Loose check vs a pure-f32 forward (documents the bf16-fc1-input contract).
    y_f32 = reference_forward_f32(x, w1, b1, w2, b2)
    err_f32 = float(jnp.max(jnp.abs(y - y_f32)))
    assert jnp.allclose(y, y_f32, atol=5e-2, rtol=5e-2), err_f32

    print("KERNEL_OK")
</pallas_src>

<mosaic_0001>
module attributes {stable_mosaic.version = 11 : i64} {
  func.func @mlp_regressor_kernel(%arg0: i32, %arg1: memref<256x32xf32, #tpu.memory_space<vmem>>, %arg2: memref<32x50xbf16, #tpu.memory_space<vmem>>, %arg3: memref<1x50xf32, #tpu.memory_space<vmem>>, %arg4: memref<1x50xf32, #tpu.memory_space<vmem>>, %arg5: memref<1x1xf32, #tpu.memory_space<vmem>>, %arg6: memref<1x256xf32, #tpu.memory_space<vmem>>) attributes {dimension_semantics = [#tpu.dimension_semantics<parallel>], iteration_bounds = array<i64: 1>, scalar_prefetch = 0 : i64, scratch_operands = 0 : i64, tpu.core_type = #tpu.core_type<tc>, window_params = [{transform_indices = @transform_0, window_bounds = array<i64: 256, 32>}, {pipeline_mode = #tpu.pipeline_mode<synchronous>, transform_indices = @transform_1, window_bounds = array<i64: 32, 50>}, {pipeline_mode = #tpu.pipeline_mode<synchronous>, transform_indices = @transform_2, window_bounds = array<i64: 1, 50>}, {pipeline_mode = #tpu.pipeline_mode<synchronous>, transform_indices = @transform_3, window_bounds = array<i64: 1, 50>}, {pipeline_mode = #tpu.pipeline_mode<synchronous>, transform_indices = @transform_4, window_bounds = array<i64: 1, 1>}, {transform_indices = @transform_5, window_bounds = array<i64: 1, 256>}]} {
    %c0 = arith.constant 0 : index
    %c0_0 = arith.constant 0 : index
    %0 = vector.load %arg1[%c0, %c0_0] : memref<256x32xf32, #tpu.memory_space<vmem>>, vector<256x32xf32>
    %1 = arith.truncf %0 : vector<256x32xf32> to vector<256x32xbf16>
    %c0_1 = arith.constant 0 : index
    %c0_2 = arith.constant 0 : index
    %2 = vector.load %arg2[%c0_1, %c0_2] : memref<32x50xbf16, #tpu.memory_space<vmem>>, vector<32x50xbf16>
    %cst = arith.constant dense<0.000000e+00> : vector<256x50xf32>
    %3 = tpu.matmul %1, %2, %cst {dimension_numbers = #tpu.dot_dimension_numbers<[1], [0], [0], [1], [0, 0, 1, 1], [], []>} : vector<256x32xbf16>, vector<32x50xbf16>, vector<256x50xf32> -> vector<256x50xf32>
    %c0_3 = arith.constant 0 : index
    %c0_4 = arith.constant 0 : index
    %4 = vector.load %arg3[%c0_3, %c0_4] : memref<1x50xf32, #tpu.memory_space<vmem>>, vector<1x50xf32>
    %5 = vector.broadcast %4 : vector<1x50xf32> to vector<256x50xf32>
    %6 = arith.addf %3, %5 : vector<256x50xf32>
    %cst_5 = arith.constant 0.000000e+00 : f32
    %7 = vector.broadcast %cst_5 : f32 to vector<256x50xf32>
    %8 = arith.cmpf oge, %6, %7 : vector<256x50xf32>
    %cst_6 = arith.constant 0.229166672 : f32
    %9 = vector.broadcast %cst_6 : f32 to vector<256x50xf32>
    %10 = arith.mulf %6, %9 : vector<256x50xf32>
    %11 = arith.select %8, %6, %10 : vector<256x50xi1>, vector<256x50xf32>
    %c0_7 = arith.constant 0 : index
    %c0_8 = arith.constant 0 : index
    %12 = vector.load %arg4[%c0_7, %c0_8] : memref<1x50xf32, #tpu.memory_space<vmem>>, vector<1x50xf32>
    %cst_9 = arith.constant dense<0.000000e+00> : vector<1x256xf32>
    %13 = tpu.matmul %12, %11, %cst_9 {dimension_numbers = #tpu.dot_dimension_numbers<[1], [1], [0], [0], [0, 0, 1, 0], [], []>} : vector<1x50xf32>, vector<256x50xf32>, vector<1x256xf32> -> vector<1x256xf32>
    %c0_10 = arith.constant 0 : index
    %c0_11 = arith.constant 0 : index
    %14 = vector.load %arg5[%c0_10, %c0_11] : memref<1x1xf32, #tpu.memory_space<vmem>>, vector<1x1xf32>
    %15 = vector.broadcast %14 : vector<1x1xf32> to vector<1x256xf32>
    %16 = arith.addf %13, %15 : vector<1x256xf32>
    %c0_12 = arith.constant 0 : index
    %c0_13 = arith.constant 0 : index
    %17 = vector.load %arg6[%c0_12, %c0_13] : memref<1x256xf32, #tpu.memory_space<vmem>>, vector<1x256xf32>
    tpu.vector_store %arg6[%c0_12, %c0_13], %16 {strides = array<i32>} : memref<1x256xf32, #tpu.memory_space<vmem>>, vector<1x256xf32>,
    return
  }
  func.func @transform_0(%arg0: i32) -> (i32, i32) {
    %c0_i32 = arith.constant 0 : i32
    %c0_i32_0 = arith.constant 0 : i32
    return %arg0, %c0_i32 : i32, i32
  }
  func.func @transform_1(%arg0: i32) -> (i32, i32) {
    %c0_i32 = arith.constant 0 : i32
    %c0_i32_0 = arith.constant 0 : i32
    %c0_i32_1 = arith.constant 0 : i32
    return %c0_i32, %c0_i32_0 : i32, i32
  }
  func.func @transform_2(%arg0: i32) -> (i32, i32) {
    %c0_i32 = arith.constant 0 : i32
    %c0_i32_0 = arith.constant 0 : i32
    %c0_i32_1 = arith.constant 0 : i32
    return %c0_i32, %c0_i32_0 : i32, i32
  }
  func.func @transform_3(%arg0: i32) -> (i32, i32) {
    %c0_i32 = arith.constant 0 : i32
    %c0_i32_0 = arith.constant 0 : i32
    %c0_i32_1 = arith.constant 0 : i32
    return %c0_i32, %c0_i32_0 : i32, i32
  }
  func.func @transform_4(%arg0: i32) -> (i32, i32) {
    %c0_i32 = arith.constant 0 : i32
    %c0_i32_0 = arith.constant 0 : i32
    %c0_i32_1 = arith.constant 0 : i32
    return %c0_i32, %c0_i32_0 : i32, i32
  }
  func.func @transform_5(%arg0: i32) -> (i32, i32) {
    %c0_i32 = arith.constant 0 : i32
    %c0_i32_0 = arith.constant 0 : i32
    return %arg0, %c0_i32 : i32, i32
  }
}

</mosaic_0001>

<bundles_post_ra>
// kernel: mlp_regressor_forward.1
= control target key start
LH: loop header
LB: loop body
LE: loop exit
PB: predicated region body
PF: predicated region fallthrough
CT: control target
= control target key end

     0   :  { %vm94_vm0 = vcmask 261120   ;;  %vm411_vm1 = vcmask 408576   ;;  %v754_v53 = vmov 0   ;;  %s1048_s1 = inlined_call_operand.vmem [shape: bf16[32,50], index: 1, kind: input, shape index: {}]   ;;  %s1049_s0 = inlined_call_operand.vmem [shape: f32[200,32], index: 0, kind: input, shape index: {}]   ;;  %s1050_s3 = inlined_call_operand.vmem [shape: f32[1,50], index: 3, kind: input, shape index: {}]   ;;  %s1051_s4 = inlined_call_operand.<no memory space> [shape: f32[1,1], index: 4, kind: input, shape index: {}]   ;;  %s1052_s2 = inlined_call_operand.vmem [shape: f32[1,50], index: 2, kind: input, shape index: {}]   ;;  %s1053_s5 = inlined_call_operand.vmem [shape: f32[1,256], index: 5, kind: output, shape index: {}]  }
   0x1   :  { %v752_v0 = vld [vmem:[%s1048_s1 + $0x8] sm:$0xff]   ;;  %v753_v1 = vld [vmem:[%s1048_s1] sm:$0xff]   ;;  %v25_v5 = vld [vmem:[%s1049_s0 + $0x10] sm:$0xff]  ;;  %751 = vset.pattern.permute.xlu0 %v754_v53  ;;  %v10_v54 = vstv %s1051_s4 }
   0x2   :  { %713 = vmatprep.subr.bf16.mxu0 %v752_v0  ;;  %v23_v2 = vld [vmem:[%s1049_s0] sm:$0xff]  ;;  %v24_v3 = vld [vmem:[%s1049_s0 + $0x8] sm:$0xff]  ;;  %v26_v6 = vld [vmem:[%s1049_s0 + $0x18] sm:$0xff]  ;;  %11 = vst [vmem:[#allocation2] sm:$0x1] %v10_v54 }
   0x3   :  { %714 = vmatpush3.bf16.msra.mxu0 %v752_v0  ;;  %v55_v4 = vpack.c.bf16 %v24_v3, %v23_v2  ;;  %v27_v7 = vld [vmem:[%s1049_s0 + $0x20] sm:$0xff]  ;;  %v28_v8 = vld [vmem:[%s1049_s0 + $0x28] sm:$0xff]  ;;  %v56_v9 = vpack.c.bf16 %v26_v6, %v25_v5  ;;  %v29_v11 = vld [vmem:[%s1049_s0 + $0x30] sm:$0xff] }
   0x4   :  { %715 = vmatprep.subr.bf16.mxu0 %v753_v1  ;;  %v57_v10 = vpack.c.bf16 %v28_v8, %v27_v7  ;;  %v30_v12 = vld [vmem:[%s1049_s0 + $0x38] sm:$0xff]  ;;  %v31_v13 = vld [vmem:[%s1049_s0 + $0x40] sm:$0xff]  ;;  %v32_v14 = vld [vmem:[%s1049_s0 + $0x48] sm:$0xff] }
   0x5   :  { %717 = vmatprep.mubr.msk.bf16.mxu0 %vm94_vm0, %v55_v4  ;;  %v58_v15 = vpack.c.bf16 %v30_v12, %v29_v11  ;;  %v59_v16 = vpack.c.bf16 %v32_v14, %v31_v13  ;;  %v33_v17 = vld [vmem:[%s1049_s0 + $0x50] sm:$0xff]  ;;  %v34_v18 = vld [vmem:[%s1049_s0 + $0x58] sm:$0xff]  ;;  %v35_v19 = vld [vmem:[%s1049_s0 + $0x60] sm:$0xff] }
   0x6   :  { %v36_v20 = vld [vmem:[%s1049_s0 + $0x68] sm:$0xff]  ;;  %v60_v21 = vpack.c.bf16 %v34_v18, %v33_v17  ;;  %v37_v23 = vld [vmem:[%s1049_s0 + $0x70] sm:$0xff]  ;;  %v38_v24 = vld [vmem:[%s1049_s0 + $0x78] sm:$0xff] }
   0x7   :  { %716 = vmatpush3.bf16.msra.mxu0 %v753_v1  ;;  %v61_v22 = vpack.c.bf16 %v36_v20, %v35_v19  ;;  %v39_v25 = vld [vmem:[%s1049_s0 + $0x80] sm:$0xff]  ;;  %v40_v26 = vld [vmem:[%s1049_s0 + $0x88] sm:$0xff]  ;;  %v62_v27 = vpack.c.bf16 %v38_v24, %v37_v23  ;;  %v41_v29 = vld [vmem:[%s1049_s0 + $0x90] sm:$0xff] }
   0x8   :  { %v63_v28 = vpack.c.bf16 %v40_v26, %v39_v25  ;;  %v42_v30 = vld [vmem:[%s1049_s0 + $0x98] sm:$0xff]  ;;  %v43_v31 = vld [vmem:[%s1049_s0 + $0xa0] sm:$0xff]  ;;  %v44_v32 = vld [vmem:[%s1049_s0 + $0xa8] sm:$0xff] }
   0x9   :  { %v64_v33 = vpack.c.bf16 %v42_v30, %v41_v29  ;;  %v65_v34 = vpack.c.bf16 %v44_v32, %v43_v31  ;;  %v45_v35 = vld [vmem:[%s1049_s0 + $0xb0] sm:$0xff]  ;;  %v46_v36 = vld [vmem:[%s1049_s0 + $0xb8] sm:$0xff]  ;;  %v47_v37 = vld [vmem:[%s1049_s0 + $0xc0] sm:$0xff] }
   0xa   :  { %718 = vmatmul.mubr.msk.bf16.vlgmr.msra.gmra.mxu0 %vm94_vm0, %v56_v9  ;;  %v48_v38 = vld [vmem:[%s1049_s0 + $0xc8] sm:$0xff]  ;;  %v66_v39 = vpack.c.bf16 %v46_v36, %v45_v35  ;;  %v49_v41 = vld [vmem:[%s1049_s0 + $0xd0] sm:$0xff]  ;;  %v50_v42 = vld [vmem:[%s1049_s0 + $0xd8] sm:$0xff] }
   0xb   :  { %721 = vmatprep.mubr.msk.bf16.mxu0 %vm94_vm0, %v57_v10  ;;  %v67_v40 = vpack.c.bf16 %v48_v38, %v47_v37  ;;  %v51_v43 = vld [vmem:[%s1049_s0 + $0xe0] sm:$0xff]  ;;  %v52_v44 = vld [vmem:[%s1049_s0 + $0xe8] sm:$0xff]  ;;  %v68_v45 = vpack.c.bf16 %v50_v42, %v49_v41  ;;  %v53_v47 = vld [vmem:[%s1049_s0 + $0xf0] sm:$0xff] }
   0xc   :  { %v69_v46 = vpack.c.bf16 %v52_v44, %v51_v43  ;;  %v54_v48 = vld [vmem:[%s1049_s0 + $0xf8] sm:$0xff]  ;;  %v909_v51 = vld [vmem:[%s1050_s3] sm:$0x1] }
   0xd   :  { %v70_v49 = vpack.c.bf16 %v54_v48, %v53_v47  ;;  %711 = vmatprep.mubr.msk.f32.mxu1 %vm411_vm1, %v909_v51  ;;  %v401_v59 = vld [vmem:[#allocation2] sm:$0x1] }
   0xe   :  { %404 = vperm.xlu0 %751, %v401_v59   ;;  %v957_v19 = vld [vmem:[%s1052_s2] ss:$0 sm:$0xff] }
  0x12   :  { %722 = vmatmul.mubr.msk.bf16.gmra.mxu0 %vm94_vm0, %v58_v15 }
  0x13   :  { %725 = vmatprep.mubr.msk.bf16.mxu0 %vm94_vm0, %v59_v16 }
  0x1a   :  { %726 = vmatmul.mubr.msk.bf16.gmra.mxu0 %vm94_vm0, %v60_v21 }
  0x1b   :  { %729 = vmatprep.mubr.msk.bf16.mxu0 %vm94_vm0, %v61_v22 }
  0x22   :  { %730 = vmatmul.mubr.msk.bf16.gmra.mxu0 %vm94_vm0, %v62_v27 }
  0x23   :  { %733 = vmatprep.mubr.msk.bf16.mxu0 %vm94_vm0, %v63_v28 }
  0x2a   :  { %734 = vmatmul.mubr.msk.bf16.gmra.mxu0 %vm94_vm0, %v64_v33 }
  0x2b   :  { %737 = vmatprep.mubr.msk.bf16.mxu0 %vm94_vm0, %v65_v34 }
  0x32   :  { %738 = vmatmul.mubr.msk.bf16.gmra.mxu0 %vm94_vm0, %v66_v39 }
  0x33   :  { %741 = vmatprep.mubr.msk.bf16.mxu0 %vm94_vm0, %v67_v40 }
  0x3a   :  { %742 = vmatmul.mubr.msk.bf16.gmra.mxu0 %vm94_vm0, %v68_v45 }
  0x3b   :  { %745 = vmatprep.mubr.msk.bf16.mxu0 %vm94_vm0, %v69_v46 }
  0x42   :  { %746 = vmatmul.mubr.msk.bf16.gmra.mxu0 %vm94_vm0, %v70_v49 }
  0xca   :  { %v904_v50 = vpop.f32.mrf.mxu0 }
  0xcc   :  { %v913_v52 = vpop.f32.mrf.mxu0 }
  0xce   :  { %v918_v55 = vpop.f32.mrf.mxu0 }
  0xd0   :  { %v920_v56 = vpop.f32.mrf.mxu0 }
  0xd2   :  { %v922_v57 = vpop.f32.mrf.mxu0 }
  0xd4   :  { %v924_v58 = vpop.f32.mrf.mxu0 }
  0xd6   :  { %v926_v60 = vpop.f32.mrf.mxu0 }
  0xd8   :  { %v928_v61 = vpop.f32.mrf.mxu0 }
  0xda   :  { %v930_v62 = vpop.f32.mrf.mxu0 }
  0xdb   :  { %v218_v53 = vadd.f32 %v930_v62, %v957_v19 }
  0xdc   :  { %v932_v63 = vpop.f32.mrf.mxu0 }
  0xdd   :  { %vm314_vm13 = vcmp.ge.f32.partialorder %v218_v53, 0.0 }
  0xde   :  { %v728_v0 = vpop.f32.mrf.mxu0 }
  0xdf   :  { %v221_v44 = vadd.f32 %v728_v0, %v957_v19 }
  0xe0   :  { %v934_v1 = vpop.f32.mrf.mxu0 }
  0xe1   :  { %v347_v54 = vmul.f32 0.22916667, %v221_v44  ;;  %vm315_vm11 = vcmp.ge.f32.partialorder %v221_v44, 0.0 }
  0xe2   :  { %v731_v2 = vpop.f32.mrf.mxu0 }
  0xe3   :  { %v234_v25 = vadd.f32 %v731_v2, %v957_v19 }
  0xe4   :  { %v225_v3 = vpop.f32.mrf.mxu0 }
  0xe5   :  { %v350_v32 = vmul.f32 0.22916667, %v234_v25  ;;  %vm318_vm5 = vcmp.ge.f32.partialorder %v234_v25, 0.0  ;;  %v226_v38 = vadd.f32 %v957_v19, %v225_v3 }
  0xe6   :  { %v732_v4 = vpop.f32.mrf.mxu0 }
  0xe7   :  { %v237_v20 = vadd.f32 %v732_v4, %v957_v19  ;;  %v382_v40 = vsel %vm318_vm5, %v234_v25, %v350_v32  ;;  %v348_v45 = vmul.f32 0.22916667, %v226_v38  ;;  %vm316_vm9 = vcmp.ge.f32.partialorder %v226_v38, 0.0 }
  0xe8   :  { %v228_v5 = vpop.f32.mrf.mxu0  ;;  %v346_v4 = vmul.f32 0.22916667, %v218_v53  ;;  %v197_v32 = vadd.f32 %v957_v19, %v928_v61 }
  0xe9   :  { %v351_v26 = vmul.f32 0.22916667, %v237_v20  ;;  %vm319_vm2 = vcmp.ge.f32.partialorder %v237_v20, 0.0  ;;  %v229_v33 = vadd.f32 %v957_v19, %v228_v5  ;;  %v380_v59 = vsel %vm316_vm9, %v226_v38, %v348_v45 }
  0xea   :  { %v936_v6 = vpop.f32.mrf.mxu0  ;;  %v213_v5 = vadd.f32 %v957_v19, %v934_v1 }
  0xeb   :  { %v383_v34 = vsel %vm319_vm2, %v237_v20, %v351_v26  ;;  %v349_v39 = vmul.f32 0.22916667, %v229_v33  ;;  %vm317_vm7 = vcmp.ge.f32.partialorder %v229_v33, 0.0 }
  0xec   :  { %v938_v7 = vpop.f32.mrf.mxu0  ;;  %v345_v20 = vmul.f32 0.22916667, %v213_v5  ;;  %vm313_vm15 = vcmp.ge.f32.partialorder %v213_v5, 0.0 }
  0xed   :  { %v381_v46 = vsel %vm317_vm7, %v229_v33, %v349_v39  ;;  %v189_v39 = vadd.f32 %v918_v55, %v957_v19 }
  0xee   :  { %v940_v8 = vpop.f32.mrf.mxu0  ;;  %v377_v25 = vsel %vm313_vm15, %v213_v5, %v345_v20 }
  0xef   :  { %v253_v61 = vadd.f32 %v940_v8, %v957_v19 }
  0xf0   :  { %v942_v9 = vpop.f32.mrf.mxu0 }
  0xf2   :  { %v944_v10 = vpop.f32.mrf.mxu0 }
  0xf4   :  { %v946_v11 = vpop.f32.mrf.mxu0 }
  0xf6   :  { %v948_v12 = vpop.f32.mrf.mxu0 }
  0xf7   :  { %v269_v1 = vadd.f32 %v948_v12, %v957_v19 }
  0xf8   :  { %v950_v13 = vpop.f32.mrf.mxu0 }
  0xf9   :  { %v359_v26 = vmul.f32 0.22916667, %v269_v1 }
  0xfa   :  { %v743_v14 = vpop.f32.mrf.mxu0 }
  0xfb   :  { %v282_v47 = vadd.f32 %v743_v14, %v957_v19  ;;  %v379_v14 = vsel %vm315_vm11, %v221_v44, %v347_v54  ;;  %vm323_vm11 = vcmp.ge.f32.partialorder %v253_v61, 0.0  ;;  %v339_v44 = vmul.f32 0.22916667, %v189_v39 }
  0xfc   :  { %v952_v15 = vpop.f32.mrf.mxu0 }
  0xfd   :  { %v362_v2 = vmul.f32 0.22916667, %v282_v47  ;;  %vm330_vm12 = vcmp.ge.f32.partialorder %v282_v47, 0.0  ;;  %v274_v62 = vadd.f32 %v957_v19, %v952_v15 }
  0xfe   :  { %v744_v16 = vpop.f32.mrf.mxu0 }
  0xff   :  { %v285_v41 = vadd.f32 %v744_v16, %v957_v19  ;;  %vm328_vm0 = vcmp.ge.f32.partialorder %v274_v62, 0.0 }
 0x100   :  { %v276_v17 = vpop.f32.mrf.mxu0 }
 0x101   :  { %v363_v48 = vmul.f32 0.22916667, %v285_v41  ;;  %vm331_vm10 = vcmp.ge.f32.partialorder %v285_v41, 0.0  ;;  %v277_v0 = vadd.f32 %v957_v19, %v276_v17  ;;  %v210_v17 = vadd.f32 %v957_v19, %v932_v63 }
 0x102   :  { %v747_v18 = vpop.f32.mrf.mxu0  ;;  %v266_v63 = vadd.f32 %v944_v10, %v957_v19 }
 0x103   :  { %v298_v22 = vadd.f32 %v747_v18, %v957_v19  ;;  %v395_v3 = vsel %vm331_vm10, %v285_v41, %v363_v48  ;;  %v361_v16 = vmul.f32 0.22916667, %v277_v0  ;;  %v394_v18 = vsel %vm330_vm12, %v282_v47, %v362_v2 }
 0x104   :  { %v289_v21 = vpop.f32.mrf.mxu0  ;;  %vm329_vm14 = vcmp.ge.f32.partialorder %v277_v0, 0.0  ;;  %vm312_vm2 = vcmp.ge.f32.partialorder %v210_v17, 0.0  ;;  %vm326_vm5 = vcmp.ge.f32.partialorder %v266_v63, 0.0  ;;  %vm307_vm12 = vcmp.ge.f32.partialorder %v189_v39, 0.0 }
 0x105   :  { %v366_v28 = vmul.f32 0.22916667, %v298_v22  ;;  %vm334_vm4 = vcmp.ge.f32.partialorder %v298_v22, 0.0  ;;  %v290_v35 = vadd.f32 %v957_v19, %v289_v21  ;;  %v378_v21 = vsel %vm314_vm13, %v218_v53, %v346_v4 }
 0x106   :  { %v748_v23 = vpop.f32.mrf.mxu0  ;;  %v393_v15 = vsel %vm329_vm14, %v277_v0, %v361_v16  ;;  %v181_v48 = vadd.f32 %v957_v19, %v920_v56 }
 0x107   :  { %v301_v24 = vadd.f32 %v748_v23, %v957_v19  ;;  %v398_v37 = vsel %vm334_vm4, %v298_v22, %v366_v28  ;;  %v364_v42 = vmul.f32 0.22916667, %v290_v35  ;;  %vm332_vm8 = vcmp.ge.f32.partialorder %v290_v35, 0.0 }
 0x108   :  { %v292_v27 = vpop.f32.mrf.mxu0  ;;  %v360_v22 = vmul.f32 0.22916667, %v274_v62  ;;  %v205_v23 = vadd.f32 %v926_v60, %v957_v19  ;;  %v358_v60 = vmul.f32 0.22916667, %v266_v63 }
 0x109   :  { %v293_v29 = vadd.f32 %v957_v19, %v292_v27  ;;  %vm335_vm3 = vcmp.ge.f32.partialorder %v301_v24, 0.0  ;;  %v367_v30 = vmul.f32 0.22916667, %v301_v24  ;;  %v396_v49 = vsel %vm332_vm8, %v290_v35, %v364_v42 }
 0x10a   :  { %v392_v12 = vsel %vm328_vm0, %v274_v62, %v360_v22  ;;  %v202_v27 = vadd.f32 %v922_v57, %v957_v19  ;;  %v343_v28 = vmul.f32 0.22916667, %v205_v23  ;;  %vm311_vm4 = vcmp.ge.f32.partialorder %v205_v23, 0.0 }
 0x10b   :  { %v399_v31 = vsel %vm335_vm3, %v301_v24, %v367_v30  ;;  %v365_v36 = vmul.f32 0.22916667, %v293_v29  ;;  %vm333_vm6 = vcmp.ge.f32.partialorder %v293_v29, 0.0  ;;  %v344_v24 = vmul.f32 0.22916667, %v210_v17 }
 0x10c   :  { %679 = vmatprep.subr.msk.mxu1 %vm411_vm1, %v399_v31  ;;  %vm327_vm3 = vcmp.ge.f32.partialorder %v269_v1, 0.0  ;;  %v261_v30 = vadd.f32 %v957_v19, %v950_v13  ;;  %v342_v31 = vmul.f32 0.22916667, %v202_v27  ;;  %v375_v33 = vsel %vm311_vm4, %v205_v23, %v343_v28 }
 0x10d   :  { %680 = vmatpush3.xpose.msk.msra.mxu1 %vm411_vm1, %v383_v34  ;;  %v397_v43 = vsel %vm333_vm6, %v293_v29, %v365_v36  ;;  %v376_v29 = vsel %vm312_vm2, %v210_v17, %v344_v24  ;;  %v391_v10 = vsel %vm327_vm3, %v269_v1, %v359_v26  ;;  %vm310_vm6 = vcmp.ge.f32.partialorder %v202_v27, 0.0 }
 0x10e   :  { %681 = vmatprep.subr.msk.mxu1 %vm411_vm1, %v398_v37  ;;  %v258_v57 = vadd.f32 %v957_v19, %v946_v11  ;;  %v357_v34 = vmul.f32 0.22916667, %v261_v30  ;;  %v390_v35 = vsel %vm326_vm5, %v266_v63, %v358_v60  ;;  %vm325_vm7 = vcmp.ge.f32.partialorder %v261_v30, 0.0 }
 0x10f   :  { %v194_v13 = vadd.f32 %v957_v19, %v924_v58  ;;  %v341_v36 = vmul.f32 0.22916667, %v197_v32  ;;  %v374_v37 = vsel %vm310_vm6, %v202_v27, %v342_v31  ;;  %vm309_vm8 = vcmp.ge.f32.partialorder %v197_v32, 0.0 }
 0x110   :  { %v356_v38 = vmul.f32 0.22916667, %v258_v57  ;;  %v389_v11 = vsel %vm325_vm7, %v261_v30, %v357_v34  ;;  %vm324_vm9 = vcmp.ge.f32.partialorder %v258_v57, 0.0  ;;  %v250_v58 = vadd.f32 %v936_v6, %v957_v19 }
 0x111   :  { %682 = vmatpush3.xpose.msk.msra.mxu1 %vm411_vm1, %v382_v40  ;;  %v340_v40 = vmul.f32 0.22916667, %v194_v13  ;;  %v373_v41 = vsel %vm309_vm8, %v197_v32, %v341_v36  ;;  %vm308_vm10 = vcmp.ge.f32.partialorder %v194_v13, 0.0  ;;  %v355_v42 = vmul.f32 0.22916667, %v253_v61 }
 0x112   :  { %683 = vmatprep.subr.msk.mxu1 %vm411_vm1, %v397_v43  ;;  %v388_v8 = vsel %vm324_vm9, %v258_v57, %v356_v38  ;;  %v186_v43 = vadd.f32 %v904_v50, %v957_v19  ;;  %v354_v55 = vmul.f32 0.22916667, %v250_v58  ;;  %vm322_vm13 = vcmp.ge.f32.partialorder %v250_v58, 0.0 }
 0x113   :  { %v372_v45 = vsel %vm308_vm10, %v194_v13, %v340_v40  ;;  %v387_v6 = vsel %vm323_vm11, %v253_v61, %v355_v42  ;;  %v242_v50 = vadd.f32 %v957_v19, %v938_v7  ;;  %vm305_vm0 = vcmp.ge.f32.partialorder %v181_v48, 0.0 }
 0x114   :  { %v338_v47 = vmul.f32 0.22916667, %v186_v43  ;;  %vm306_vm14 = vcmp.ge.f32.partialorder %v186_v43, 0.0  ;;  %v386_v54 = vsel %vm322_vm13, %v250_v58, %v354_v55  ;;  %v755_v62 = vmov 1966171168  }
 0x115   :  { %684 = vmatpush3.xpose.msk.msra.mxu1 %vm411_vm1, %v381_v46  ;;  %v245_v46 = vadd.f32 %v957_v19, %v942_v9  ;;  %v178_v9 = vadd.f32 %v957_v19, %v913_v52  ;;  %v352_v0 = vmul.f32 0.22916667, %v242_v50  ;;  %vm320_vm2 = vcmp.ge.f32.partialorder %v242_v50, 0.0 }
 0x116   :  { %685 = vmatprep.subr.msk.mxu1 %vm411_vm1, %v396_v49  ;;  %v371_v49 = vsel %vm307_vm12, %v189_v39, %v339_v44  ;;  %v370_v2 = vsel %vm306_vm14, %v186_v43, %v338_v47  ;;  %v407_v52 = vlaneseq  ;;  %v586_v16 = vunpack.c.l.s4 %v755_v62 }
 0x117   :  { %v353_v53 = vmul.f32 0.22916667, %v245_v46  ;;  %vm321_vm15 = vcmp.ge.f32.partialorder %v245_v46, 0.0  ;;  %v336_v7 = vmul.f32 0.22916667, %v178_v9  ;;  %vm304_vm3 = vcmp.ge.f32.partialorder %v178_v9, 0.0 }
 0x118   :  { %v384_v4 = vsel %vm320_vm2, %v242_v50, %v352_v0  ;;  %v408_v19 = vshrl.u32 %v407_v52, 7  ;;  %v587_v20 = vunpack.c.0.s8 %v586_v16  ;;  %vm602_vm4 = vcmp.lt.s32.totalorder %v407_v52, 256 }
 0x119   :  { %686 = vmatpush3.xpose.msk.msra.mxu1 %vm411_vm1, %v380_v59  ;;  %v337_v59 = vmul.f32 0.22916667, %v181_v48  ;;  %v385_v56 = vsel %vm321_vm15, %v245_v46, %v353_v53  ;;  %v368_v5 = vsel %vm304_vm3, %v178_v9, %v336_v7 }
 0x11a   :  { %687 = vmatprep.subr.msk.mxu1 %vm411_vm1, %v395_v3  ;;  %v590_v23 = vsub.s32 %v587_v20, %v408_v19 }
 0x11b   :  { %v369_v3 = vsel %vm305_vm0, %v181_v48, %v337_v59 }
 0x11d   :  { %688 = vmatpush3.xpose.msk.msra.mxu1 %vm411_vm1, %v379_v14  ;;  %v409_v14 = vsub.s32 0, %v408_v19 }
 0x11e   :  { %689 = vmatprep.subr.msk.mxu1 %vm411_vm1, %v394_v18  ;;  %v405_v18 = vpop.permute.xlu0 %404 }
 0x11f   :  { %v410_v17 = vrot.slane %v405_v18, %v409_v14 }
 0x121   :  { %690 = vmatpush3.xpose.msk.msra.mxu1 %vm411_vm1, %v378_v21 }
 0x122   :  { %691 = vmatprep.subr.msk.mxu1 %vm411_vm1, %v393_v15 }
 0x125   :  { %692 = vmatpush3.xpose.msk.msra.mxu1 %vm411_vm1, %v377_v25 }
 0x126   :  { %693 = vmatprep.subr.msk.mxu1 %vm411_vm1, %v392_v12 }
 0x129   :  { %694 = vmatpush3.xpose.msk.msra.mxu1 %vm411_vm1, %v376_v29 }
 0x12a   :  { %695 = vmatprep.subr.msk.mxu1 %vm411_vm1, %v391_v10 }
 0x12d   :  { %696 = vmatpush3.xpose.msk.msra.mxu1 %vm411_vm1, %v375_v33 }
 0x12e   :  { %697 = vmatprep.subr.msk.mxu1 %vm411_vm1, %v390_v35 }
 0x131   :  { %698 = vmatpush3.xpose.msk.msra.mxu1 %vm411_vm1, %v374_v37 }
 0x132   :  { %699 = vmatprep.subr.msk.mxu1 %vm411_vm1, %v389_v11 }
 0x135   :  { %700 = vmatpush3.xpose.msk.msra.mxu1 %vm411_vm1, %v373_v41 }
 0x136   :  { %701 = vmatprep.subr.msk.mxu1 %vm411_vm1, %v388_v8 }
 0x139   :  { %702 = vmatpush3.xpose.msk.msra.mxu1 %vm411_vm1, %v372_v45 }
 0x13a   :  { %703 = vmatprep.subr.msk.mxu1 %vm411_vm1, %v387_v6 }
 0x13d   :  { %704 = vmatpush3.xpose.msk.msra.mxu1 %vm411_vm1, %v371_v49 }
 0x13e   :  { %705 = vmatprep.subr.msk.mxu1 %vm411_vm1, %v386_v54 }
 0x141   :  { %706 = vmatpush3.xpose.msk.msra.mxu1 %vm411_vm1, %v370_v2 }
 0x142   :  { %707 = vmatprep.subr.msk.mxu1 %vm411_vm1, %v385_v56 }
 0x145   :  { %708 = vmatpush3.xpose.msk.msra.mxu1 %vm411_vm1, %v369_v3 }
 0x146   :  { %709 = vmatprep.subr.msk.mxu1 %vm411_vm1, %v384_v4 }
 0x149   :  { %710 = vmatpush3.xpose.msk.msra.mxu1 %vm411_vm1, %v368_v5 }
 0x14c   :  { %712 = vmatmul.mubr.msk.f32.vlgmr.msra.gmra.mxu1 %vm411_vm1, %v909_v51 }
 0x20c   :  { %v577_v21 = vpop.f32.mrf.mxu1 }
 0x20d   :  { %v578_v22 = vadd.f32 %v577_v21, %v410_v17 }
 0x20e   :  { %v579_v1 = vpop.f32.mrf.mxu1 }
 0x20f   :  { %v580_v15 = vadd.f32 %v579_v1, %v410_v17 }
 0x211   :  { %v584_v24 = vcombine.low %v578_v22, %v580_v15 }
 0x213   :  { %v591_v25 = vrot.slane %v584_v24, %v590_v23 }
 0x215   :  { %v598_v63 = vrot.slane %v591_v25, %v590_v23 }
 0x217   :  { %604 = vst.msk [vmem:[%s1053_s5] sm:$0x3] %vm602_vm4, %v598_v63 }

</bundles_post_ra>
